<compile_context>
chip_gen: v7x
topology: tpu7x:2x2x1
jax: 0.10.0
libtpu: 0.0.40
codegen_flags: <defaults>
</compile_context>

<pallas_src>
import numpy as np

import jax
import jax.numpy as jnp
from jax.experimental import pallas as pl
from jax.experimental.pallas import tpu as pltpu

SIGMAS = [0.5, 0.8, 1.2]


def _gaussian_kernel1d(ksize: int, sigma: float) -> np.ndarray:
    # Matches torchvision _get_gaussian_kernel1d exactly.
    half = (ksize - 1) * 0.5
    x = np.linspace(-half, half, ksize)
    pdf = np.exp(-0.5 * (x / sigma) ** 2)
    return pdf / pdf.sum()


def _blur_matrix(n: int, k1d: np.ndarray) -> np.ndarray:
    """(n, n) matrix folding reflect-padding + 1-D Gaussian conv: y = M @ x."""
    ksize = len(k1d)
    pad = ksize // 2
    m = np.zeros((n, n), np.float64)
    for i in range(n):
        for j in range(ksize):
            q = i + j - pad
            if q < 0:                      # torch F.pad(mode="reflect")
                q = -q
            elif q >= n:
                q = 2 * (n - 1) - q
            m[i, q] += k1d[j]
    return m


def _choose_fold(n: int, w: int, max_lanes: int = 1024) -> int:
    """How many images to fold side-by-side along the lane axis per grid step.

    Smallest divisor of n that makes fold*W a multiple of 128 (lane-dense
    stores with the least block-diagonal FLOP waste).  For W >= 128 no folding
    is needed; if no aligned fold exists the block simply equals the full
    array extent (always a legal BlockSpec).
    """
    if w >= 128:
        return 1
    divs = [d for d in range(1, n + 1) if n % d == 0]
    aligned = [d for d in divs if (d * w) % 128 == 0 and d * w <= max_lanes]
    if aligned:
        return min(aligned)
    small = [d for d in divs if d * w <= max_lanes]
    return max(small) if small else 1


def _blur_kernel(x_ref, th_ref, bd_ref, o_ref):
    # x_ref:  (H, fold*W) slab block (fold images side-by-side on the lane axis)
    # th_ref: (H, H)               bf16 vertical blur matrix (reflect folded in)
    # bd_ref: (fold*W, fold*W)     bf16 block-diag of fold copies of Tw^T
    x = x_ref[...].astype(jnp.bfloat16)        # uint8/f32 -> bf16 (single MXU pass)
    # Vertical pass: one 2-D matmul on the MXU, f32 accumulation.
    t = jnp.dot(th_ref[...], x, preferred_element_type=jnp.float32)
    # Horizontal pass: block-diagonal Tw^T keeps images independent.
    out = jnp.dot(t.astype(jnp.bfloat16), bd_ref[...],
                  preferred_element_type=jnp.float32)
    if jnp.issubdtype(o_ref.dtype, jnp.integer):
        info = jnp.iinfo(o_ref.dtype)
        out = jnp.clip(jnp.round(out), info.min, info.max)   # round AND clamp
    o_ref[...] = out.astype(o_ref.dtype)


def gaussian_blur(img: jax.Array, mag: int = 0) -> jax.Array:
    """img: (B, C, H, W). Returns GaussianBlur(img) with sigma = SIGMAS[mag]."""
    b, c, h, w = img.shape
    ksize = (int(min(w, h) / 2) // 4) * 2 + 1
    pad = ksize // 2
    if pad >= min(h, w):
        raise ValueError("reflect padding requires ksize // 2 < min(H, W)")
    k1d = _gaussian_kernel1d(ksize, SIGMAS[mag])

    n = b * c
    fold = _choose_fold(n, w)
    lanes = fold * w
    n_blocks = n // fold

    # Blur weights in bf16 (feedback: halves weight footprint; single-pass MXU).
    th = jnp.asarray(_blur_matrix(h, k1d), jnp.bfloat16)          # (H, H)
    twt = _blur_matrix(w, k1d).T                                  # (W, W)
    bd_np = np.zeros((lanes, lanes), np.float32)
    for f in range(fold):
        bd_np[f * w:(f + 1) * w, f * w:(f + 1) * w] = twt
    bd = jnp.asarray(bd_np, jnp.bfloat16)                         # (fold*W, fold*W)

    # Lane-dense slab: (B,C,H,W) -> (H, N*W).  Wrapper-side layout plumbing so
    # the kernel sees >=128 lanes for both matmuls and the output store.
    x_slab = jnp.transpose(img.reshape(n, h, w), (1, 0, 2)).reshape(h, n * w)

    # VMEM budget: double-buffered in/out blocks + weights + f32 intermediates.
    itemsize = jnp.dtype(img.dtype).itemsize
    io_block = h * lanes * itemsize
    weight_bytes = (h * h + lanes * lanes) * 2                    # bf16
    step_bytes = 2 * 2 * io_block + 2 * weight_bytes + 2 * h * lanes * 4
    vmem_limit = int(min(48 * 2 ** 20, max(32 * 2 ** 20, 4 * step_bytes)))

    out_shape = jax.ShapeDtypeStruct((h, n * w), img.dtype)

    def build(single_buffer_weights: bool):
        # Constant-index weights: single-buffer them (double-buffering a block
        # whose index never changes just wastes VMEM).
        wkw = {"pipeline_mode": pl.Buffered(1)} if single_buffer_weights else {}
        return pl.pallas_call(
            _blur_kernel,
            out_shape=out_shape,
            grid=(n_blocks,),
            in_specs=[
                pl.BlockSpec((h, lanes), lambda i: (0, i)),
                pl.BlockSpec((h, h), lambda i: (0, 0), **wkw),
                pl.BlockSpec((lanes, lanes), lambda i: (0, 0), **wkw),
            ],
            out_specs=pl.BlockSpec((h, lanes), lambda i: (0, i)),
            compiler_params=pltpu.CompilerParams(
                dimension_semantics=("parallel",),
                vmem_limit_bytes=vmem_limit,
            ),
        )

    try:
        out_slab = jax.block_until_ready(build(True)(x_slab, th, bd))
    except Exception:
        # TODO(synk): pipeline_mode=pl.Buffered(1) unsupported in this jax
        # version; fall back to default (double-buffered) constant weights.
        out_slab = jax.block_until_ready(build(False)(x_slab, th, bd))

    out = jnp.transpose(out_slab.reshape(h, n, w), (1, 0, 2))
    return out.reshape(b, c, h, w)


def _reference_blur_np(x: np.ndarray, mag: int = 0) -> np.ndarray:
    """float64 numpy reference: reflect-pad + separable depthwise Gaussian conv."""
    b, c, h, w = x.shape
    ksize = (int(min(w, h) / 2) // 4) * 2 + 1
    pad = ksize // 2
    k1d = _gaussian_kernel1d(ksize, SIGMAS[mag]).astype(np.float64)
    xp = np.pad(np.asarray(x, np.float64),
                ((0, 0), (0, 0), (pad, pad), (pad, pad)), mode="reflect")
    tmp = np.zeros((b, c, h + 2 * pad, w), np.float64)
    for j in range(ksize):
        tmp += k1d[j] * xp[:, :, :, j:j + w]
    out = np.zeros((b, c, h, w), np.float64)
    for i in range(ksize):
        out += k1d[i] * tmp[:, :, i:i + h, :]
    return out


if __name__ == "__main__":
    key = jax.random.PRNGKey(0)
    # (b, c, h, w) = (2, 4, 16, 16)  -> ksize = 5, pad = 2, fold = 8 -> 128 lanes
    x = jax.random.normal(key, (2, 4, 16, 16), dtype=jnp.float32)

    y = gaussian_blur(x, mag=1)          # sigma = 0.8, deterministic
    y = jax.block_until_ready(y)

    y_ref = _reference_blur_np(np.asarray(x), mag=1)
    # Tolerance reflects single-pass bf16 MXU operands (f32 accumulate) vs a
    # float64 direct-convolution reference; blur-structure errors would be O(1).
    np.testing.assert_allclose(np.asarray(y, np.float64), y_ref,
                               rtol=2e-2, atol=3e-2)
    print("KERNEL_OK")
</pallas_src>

<mosaic_0001>
module attributes {stable_mosaic.version = 11 : i64} {
  func.func @_blur_kernel(%arg0: i32, %arg1: memref<16x128xf32, #tpu.memory_space<vmem>>, %arg2: memref<16x16xbf16, #tpu.memory_space<vmem>>, %arg3: memref<128x128xbf16, #tpu.memory_space<vmem>>, %arg4: memref<16x128xf32, #tpu.memory_space<vmem>>) attributes {dimension_semantics = [#tpu.dimension_semantics<parallel>], iteration_bounds = array<i64: 1>, scalar_prefetch = 0 : i64, scratch_operands = 0 : i64, tpu.core_type = #tpu.core_type<tc>, window_params = [{transform_indices = @transform_0, window_bounds = array<i64: 16, 128>}, {pipeline_mode = #tpu.pipeline_mode<synchronous>, transform_indices = @transform_1, window_bounds = array<i64: 16, 16>}, {pipeline_mode = #tpu.pipeline_mode<synchronous>, transform_indices = @transform_2, window_bounds = array<i64: 128, 128>}, {transform_indices = @transform_3, window_bounds = array<i64: 16, 128>}]} {
    %c0 = arith.constant 0 : index
    %c0_0 = arith.constant 0 : index
    %0 = vector.load %arg1[%c0, %c0_0] : memref<16x128xf32, #tpu.memory_space<vmem>>, vector<16x128xf32>
    %1 = arith.truncf %0 : vector<16x128xf32> to vector<16x128xbf16>
    %c0_1 = arith.constant 0 : index
    %c0_2 = arith.constant 0 : index
    %2 = vector.load %arg2[%c0_1, %c0_2] : memref<16x16xbf16, #tpu.memory_space<vmem>>, vector<16x16xbf16>
    %cst = arith.constant dense<0.000000e+00> : vector<16x128xf32>
    %3 = tpu.matmul %2, %1, %cst {dimension_numbers = #tpu.dot_dimension_numbers<[1], [0], [0], [1], [0, 0, 1, 1], [], []>} : vector<16x16xbf16>, vector<16x128xbf16>, vector<16x128xf32> -> vector<16x128xf32>
    %4 = arith.truncf %3 : vector<16x128xf32> to vector<16x128xbf16>
    %c0_3 = arith.constant 0 : index
    %c0_4 = arith.constant 0 : index
    %5 = vector.load %arg3[%c0_3, %c0_4] : memref<128x128xbf16, #tpu.memory_space<vmem>>, vector<128x128xbf16>
    %cst_5 = arith.constant dense<0.000000e+00> : vector<16x128xf32>
    %6 = tpu.matmul %4, %5, %cst_5 {dimension_numbers = #tpu.dot_dimension_numbers<[1], [0], [0], [1], [0, 0, 1, 1], [], []>} : vector<16x128xbf16>, vector<128x128xbf16>, vector<16x128xf32> -> vector<16x128xf32>
    %c0_6 = arith.constant 0 : index
    %c0_7 = arith.constant 0 : index
    %7 = vector.load %arg4[%c0_6, %c0_7] : memref<16x128xf32, #tpu.memory_space<vmem>>, vector<16x128xf32>
    tpu.vector_store %arg4[%c0_6, %c0_7], %6 {strides = array<i32>} : memref<16x128xf32, #tpu.memory_space<vmem>>, vector<16x128xf32>,
    return
  }
  func.func @transform_0(%arg0: i32) -> (i32, i32) {
    %c0_i32 = arith.constant 0 : i32
    %c0_i32_0 = arith.constant 0 : i32
    return %c0_i32, %arg0 : i32, i32
  }
  func.func @transform_1(%arg0: i32) -> (i32, i32) {
    %c0_i32 = arith.constant 0 : i32
    %c0_i32_0 = arith.constant 0 : i32
    %c0_i32_1 = arith.constant 0 : i32
    return %c0_i32, %c0_i32_0 : i32, i32
  }
  func.func @transform_2(%arg0: i32) -> (i32, i32) {
    %c0_i32 = arith.constant 0 : i32
    %c0_i32_0 = arith.constant 0 : i32
    %c0_i32_1 = arith.constant 0 : i32
    return %c0_i32, %c0_i32_0 : i32, i32
  }
  func.func @transform_3(%arg0: i32) -> (i32, i32) {
    %c0_i32 = arith.constant 0 : i32
    %c0_i32_0 = arith.constant 0 : i32
    return %c0_i32, %arg0 : i32, i32
  }
}

module attributes {stable_mosaic.version = 11 : i64} {
  func.func @_blur_kernel(%arg0: i32, %arg1: memref<16x128xf32, #tpu.memory_space<vmem>>, %arg2: memref<16x16xbf16, #tpu.memory_space<vmem>>, %arg3: memref<128x128xbf16, #tpu.memory_space<vmem>>, %arg4: memref<16x128xf32, #tpu.memory_space<vmem>>) attributes {dimension_semantics = [#tpu.dimension_semantics<parallel>], iteration_bounds = array<i64: 1>, scalar_prefetch = 0 : i64, scratch_operands = 0 : i64, tpu.core_type = #tpu.core_type<tc>, window_params = [{transform_indices = @transform_0, window_bounds = array<i64: 16, 128>}, {pipeline_mode = #tpu.pipeline_mode<synchronous>, transform_indices = @transform_1, window_bounds = array<i64: 16, 16>}, {pipeline_mode = #tpu.pipeline_mode<synchronous>, transform_indices = @transform_2, window_bounds = array<i64: 128, 128>}, {transform_indices = @transform_3, window_bounds = array<i64: 16, 128>}]} {
    %c0 = arith.constant 0 : index
    %c0_0 = arith.constant 0 : index
    %0 = vector.load %arg1[%c0, %c0_0] : memref<16x128xf32, #tpu.memory_space<vmem>>, vector<16x128xf32>
    %1 = arith.truncf %0 : vector<16x128xf32> to vector<16x128xbf16>
    %c0_1 = arith.constant 0 : index
    %c0_2 = arith.constant 0 : index
    %2 = vector.load %arg2[%c0_1, %c0_2] : memref<16x16xbf16, #tpu.memory_space<vmem>>, vector<16x16xbf16>
    %cst = arith.constant dense<0.000000e+00> : vector<16x128xf32>
    %3 = tpu.matmul %2, %1, %cst {dimension_numbers = #tpu.dot_dimension_numbers<[1], [0], [0], [1], [0, 0, 1, 1], [], []>} : vector<16x16xbf16>, vector<16x128xbf16>, vector<16x128xf32> -> vector<16x128xf32>
    %4 = arith.truncf %3 : vector<16x128xf32> to vector<16x128xbf16>
    %c0_3 = arith.constant 0 : index
    %c0_4 = arith.constant 0 : index
    %5 = vector.load %arg3[%c0_3, %c0_4] : memref<128x128xbf16, #tpu.memory_space<vmem>>, vector<128x128xbf16>
    %cst_5 = arith.constant dense<0.000000e+00> : vector<16x128xf32>
    %6 = tpu.matmul %4, %5, %cst_5 {dimension_numbers = #tpu.dot_dimension_numbers<[1], [0], [0], [1], [0, 0, 1, 1], [], []>} : vector<16x128xbf16>, vector<128x128xbf16>, vector<16x128xf32> -> vector<16x128xf32>
    %c0_6 = arith.constant 0 : index
    %c0_7 = arith.constant 0 : index
    %7 = vector.load %arg4[%c0_6, %c0_7] : memref<16x128xf32, #tpu.memory_space<vmem>>, vector<16x128xf32>
    tpu.vector_store %arg4[%c0_6, %c0_7], %6 {strides = array<i32>} : memref<16x128xf32, #tpu.memory_space<vmem>>, vector<16x128xf32>,
    return
  }
  func.func @transform_0(%arg0: i32) -> (i32, i32) {
    %c0_i32 = arith.constant 0 : i32
    %c0_i32_0 = arith.constant 0 : i32
    return %c0_i32, %arg0 : i32, i32
  }
  func.func @transform_1(%arg0: i32) -> (i32, i32) {
    %c0_i32 = arith.constant 0 : i32
    %c0_i32_0 = arith.constant 0 : i32
    %c0_i32_1 = arith.constant 0 : i32
    return %c0_i32, %c0_i32_0 : i32, i32
  }
  func.func @transform_2(%arg0: i32) -> (i32, i32) {
    %c0_i32 = arith.constant 0 : i32
    %c0_i32_0 = arith.constant 0 : i32
    %c0_i32_1 = arith.constant 0 : i32
    return %c0_i32, %c0_i32_0 : i32, i32
  }
  func.func @transform_3(%arg0: i32) -> (i32, i32) {
    %c0_i32 = arith.constant 0 : i32
    %c0_i32_0 = arith.constant 0 : i32
    return %c0_i32, %arg0 : i32, i32
  }
}

</mosaic_0001>

<bundles_post_ra>
// kernel: tpu_custom_call.1
= control target key start
LH: loop header
LB: loop body
LE: loop exit
PB: predicated region body
PF: predicated region fallthrough
CT: control target
= control target key end

     0   :  { %8 = vsyncpa [#allocation3], 0  ;;  %s488_s0 = inlined_call_operand.hbm [shape: f32[16,128], index: 0, kind: input, shape index: {}]   ;;  %s489_s1 = inlined_call_operand.hbm [shape: bf16[16,16], index: 1, kind: input, shape index: {}]   ;;  %s490_s2 = inlined_call_operand.hbm [shape: bf16[128,128], index: 2, kind: input, shape index: {}]   ;;  %s491_s3 = inlined_call_operand.hbm [shape: f32[16,128], index: 3, kind: output, shape index: {}]  }
   0x1   :  { %9 = vsyncpa [#allocation6], 0 }
   0x2   :  { %10 = vsyncpa [#allocation4], 0  ;;  %s398_s12 = smov [#allocation5]   ;;  %s304_s16 = scalar_lea.hbm %s489_s1, 128 }
   0x3   :  { %s28_s13 = sshll.u32 %s398_s12, 4  ;;  %p305_p0 = scmp.ne.s32.totalorder %s489_s1, %s304_s16  ;;  %s29_s13 = int_to_ptr.vmem [resolvable:$true] %s28_s13 }
   0x4   :  { %p308_p1 = scmp.lt.u32.totalorder %s304_s16, %s489_s1 }
   0x6   :  { %p310_p2 = pnand %p308_p1, %p305_p0 }
   0x8   :  { %313 = shalt.err (!%p310_p2)
}
   0x9   :  { %s314_s21 = scalar_lea.vmem %s29_s13, 128  ;;  %p319_p4 = scmp.lt.s32.totalorder %s29_s13, %s29_s13 }
   0xa   :  { %p315_p3 = scmp.ne.s32.totalorder %s29_s13, %s314_s21  ;;  %p320_p5 = scmp.lt.s32.totalorder %s314_s21, %s314_s21 }
   0xc   :  { %p321_p6 = por %p320_p5, %p319_p4 }
   0xe   :  { %p322_p7 = pnand %p321_p6, %p315_p3 }
  0x10   :  { %325 = shalt.err (!%p322_p7)
}
  0x11   :  { %s399_s22 = smov 64   ;;  %s400_s23 = smov 4  }
  0x12   :  { %34 = dma.hbm_to_vmem [thread:$0]  %s489_s1, 128, %s29_s13, [#allocation6], %s399_s22, %s399_s22, %s400_s23  }
  0x13   :  { %s401_s26 = smov [#allocation2]   ;;  %s326_s30 = scalar_lea.hbm %s488_s0, 256 }
  0x14   :  { %s16_s27 = sshll.u32 %s401_s26, 4  ;;  %p327_p8 = scmp.ne.s32.totalorder %s488_s0, %s326_s30  ;;  %s17_s27 = int_to_ptr.vmem [resolvable:$true] %s16_s27 }
  0x15   :  { %p330_p9 = scmp.lt.u32.totalorder %s326_s30, %s488_s0 }
  0x17   :  { %p332_p10 = pnand %p330_p9, %p327_p8 }
  0x19   :  { %335 = shalt.err (!%p332_p10)
}
  0x1a   :  { %s336_s8 = scalar_lea.vmem %s17_s27, 256  ;;  %p341_p12 = scmp.lt.s32.totalorder %s17_s27, %s17_s27 }
  0x1b   :  { %p337_p11 = scmp.ne.s32.totalorder %s17_s27, %s336_s8  ;;  %p342_p13 = scmp.lt.s32.totalorder %s336_s8, %s336_s8 }
  0x1d   :  { %p343_p0 = por %p342_p13, %p341_p12 }
  0x1f   :  { %p344_p1 = pnand %p343_p0, %p337_p11 }
  0x21   :  { %347 = shalt.err (!%p344_p1)
}
  0x22   :  { %s402_s1 = smov 128   ;;  %s403_s9 = smov 8  }
  0x23   :  { %22 = dma.hbm_to_vmem [thread:$0]  %s488_s0, 256, %s17_s27, [#allocation3], %s402_s1, %s402_s1, %s403_s9  }
  0x24   :  { %s404_s12 = smov [#allocation7]   ;;  %s348_s16 = scalar_lea.hbm %s490_s2, 1024 }
  0x25   :  { %s40_s13 = sshll.u32 %s404_s12, 4  ;;  %p349_p2 = scmp.ne.s32.totalorder %s490_s2, %s348_s16  ;;  %s41_s13 = int_to_ptr.vmem [resolvable:$true] %s40_s13 }
  0x26   :  { %p352_p3 = scmp.lt.u32.totalorder %s348_s16, %s490_s2 }
  0x28   :  { %p354_p4 = pnand %p352_p3, %p349_p2 }
  0x2a   :  { %357 = shalt.err (!%p354_p4)
}
  0x2b   :  { %s358_s21 = scalar_lea.vmem %s41_s13, 1024  ;;  %p363_p6 = scmp.lt.s32.totalorder %s41_s13, %s41_s13 }
  0x2c   :  { %p359_p5 = scmp.ne.s32.totalorder %s41_s13, %s358_s21  ;;  %p364_p7 = scmp.lt.s32.totalorder %s358_s21, %s358_s21 }
  0x2e   :  { %p365_p8 = por %p364_p7, %p363_p6 }
  0x30   :  { %p366_p9 = pnand %p365_p8, %p359_p5 }
  0x32   :  { %369 = shalt.err (!%p366_p9)
}
  0x33   :  { %46 = dma.hbm_to_vmem [thread:$0]  %s490_s2, 1024, %s41_s13, [#allocation6], %s399_s22, %s399_s22, %s400_s23  }
  0x34   :  { %392 = dma.done.wait [#allocation3], 256  }
  0x35   :  { %393 = vsyncadd [#allocation3], 4294967040 }
  0x36   :  { %394 = dma.done.wait [#allocation6], 1152  }
  0x37   :  { %395 = vsyncadd [#allocation6], 4294966144  ;;  %v405_v0 = vmov 0.0   ;;  %vm406_vm0 = vmmov 0   ;;  %v57_v1 = vld [vmem:[#allocation2] sm:$0xff]  ;;  %v58_v2 = vld [vmem:[#allocation2 + $0x8] sm:$0xff] }
  0x38   :  { %259 = vmatprep.subr.bf16.mxu0 %v405_v0  ;;  %261 = vmatprep.mubr.msk.bf16.mxu0 %vm406_vm0, %v405_v0  ;;  %v59_v3 = vpack.c.bf16 %v58_v2, %v57_v1  ;;  %v295_v4 = vld [vmem:[#allocation5] sm:$0xff]   ;;  %v296_v5 = vld [vmem:[#allocation7] sm:$0xff]   ;;  %vm67_vm1 = vcmask 130048   ;;  %v297_v6 = vld [vmem:[#allocation7 + $0x8] sm:$0xff]   ;;  %s407_s2 = smov [#allocation8]  }
  0x39   :  { %265 = vmatprep.subr.bf16.mxu1 %v405_v0  ;;  %281 = vmatprep.mubr.msk.bf16.mxu1 %vm406_vm0, %v405_v0  ;;  %v298_v7 = vld [vmem:[#allocation7 + $0x10] sm:$0xff]   ;;  %v299_v8 = vld [vmem:[#allocation7 + $0x18] sm:$0xff]   ;;  %v300_v9 = vld [vmem:[#allocation7 + $0x20] sm:$0xff]   ;;  %s225_s22 = sshll.u32 %s407_s2, 4  ;;  %s226_s22 = int_to_ptr.vmem [resolvable:$true] %s225_s22 }
  0x3a   :  { %260 = vmatpush3.bf16.msra.mxu0 %v59_v3  ;;  %266 = vmatpush3.bf16.msra.mxu1 %v296_v5  ;;  %v301_v10 = vld [vmem:[#allocation7 + $0x28] sm:$0xff]   ;;  %v302_v11 = vld [vmem:[#allocation7 + $0x30] sm:$0xff]   ;;  %v303_v12 = vld [vmem:[#allocation7 + $0x38] sm:$0xff]   ;;  %s370_s23 = scalar_lea.vmem %s226_s22, 256  ;;  %p375_p11 = scmp.lt.s32.totalorder %s226_s22, %s226_s22 }
  0x3b   :  { %267 = vmatprep.subr.bf16.mxu1 %v405_v0  ;;  %p371_p10 = scmp.ne.s32.totalorder %s226_s22, %s370_s23  ;;  %p376_p12 = scmp.lt.s32.totalorder %s370_s23, %s370_s23 }
  0x3d   :  { %262 = vmatmul.mubr.msk.bf16.vlgmr.msra.gmra.mrb[0].mxu0 %vm67_vm1, %v295_v4  ;;  %p377_p13 = por %p376_p12, %p375_p11 }
  0x3e   :  { %268 = vmatpush3.bf16.msra.mxu1 %v297_v6 }
  0x3f   :  { %269 = vmatprep.subr.bf16.mxu1 %v405_v0  ;;  %p378_p0 = pnand %p377_p13, %p371_p10 }
  0x42   :  { %270 = vmatpush3.bf16.msra.mxu1 %v298_v7 }
  0x43   :  { %271 = vmatprep.subr.bf16.mxu1 %v405_v0 }
  0x46   :  { %272 = vmatpush3.bf16.msra.mxu1 %v299_v8 }
  0x47   :  { %273 = vmatprep.subr.bf16.mxu1 %v405_v0 }
  0x4a   :  { %274 = vmatpush3.bf16.msra.mxu1 %v300_v9 }
  0x4b   :  { %275 = vmatprep.subr.bf16.mxu1 %v405_v0 }
  0x4e   :  { %276 = vmatpush3.bf16.msra.mxu1 %v301_v10 }
  0x4f   :  { %277 = vmatprep.subr.bf16.mxu1 %v405_v0 }
  0x52   :  { %278 = vmatpush3.bf16.msra.mxu1 %v302_v11 }
  0x53   :  { %279 = vmatprep.subr.bf16.mxu1 %v405_v0 }
  0x56   :  { %280 = vmatpush3.bf16.msra.mxu1 %v303_v12 }
 0x110   :  { %v105_v13 = vpop.f32.mrb[0].mxu0 }
 0x111   :  { %v263_v14 = vpop.f32.mrb[1].mxu0 }
 0x112   :  { %v108_v15 = vpop.f32.mrb[2].mxu0 }
 0x113   :  { %v112_v16 = vpack.c.bf16 %v108_v15, %v105_v13  ;;  %v264_v17 = vpop.f32.mrb[3].mxu0 }
 0x115   :  { %282 = vmatmul.mubr.bf16.vlgmr.msra.gmra.mrb[0].mxu1 %v112_v16 }
 0x1e8   :  { %v211_v18 = vpop.f32.mrb[0].mxu1 }
 0x1e9   :  { %218 = vst [vmem:[#allocation8] sm:$0xff] %v211_v18  ;;  %v283_v19 = vpop.f32.mrb[1].mxu1 }
 0x1ea   :  { %v214_v20 = vpop.f32.mrb[2].mxu1 }
 0x1eb   :  { %219 = vst [vmem:[#allocation8 + $0x8] sm:$0xff] %v214_v20  ;;  %v284_v21 = vpop.f32.mrb[3].mxu1 }
 0x1ec   :  { %381 = shalt.err (!%p378_p0)
}
 0x1ed   :  { %s382_s27 = scalar_lea.hbm %s491_s3, 256 }
 0x1ee   :  { %p383_p1 = scmp.ne.s32.totalorder %s491_s3, %s382_s27  ;;  %p386_p2 = scmp.lt.u32.totalorder %s382_s27, %s491_s3 }
 0x1f0   :  { %p388_p3 = pnand %p386_p2, %p383_p1 }
 0x1f2   :  { %391 = shalt.err (!%p388_p3)
}
 0x1f3   :  { %231 = dma.vmem_to_hbm [thread:$0]  %s226_s22, 256, %s491_s3, [#allocation4], %s402_s1, %s402_s1, %s403_s9  }
 0x1f4   :  { %396 = dma.done.wait [#allocation4], 256  }
 0x1f5   :  { %397 = vsyncadd [#allocation4], 4294967040 }
 0x1f6   :  { %235 = vsyncpa [#allocation3], 1 }
 0x1f7   :  { %236 = vsyncpa [#allocation6], 1 }
 0x1f8   :  { %237 = vsyncpa [#allocation4], 1 }

// kernel: tpu_custom_call.1
= control target key start
LH: loop header
LB: loop body
LE: loop exit
PB: predicated region body
PF: predicated region fallthrough
CT: control target
= control target key end

     0   :  { %8 = vsyncpa [#allocation3], 0  ;;  %s488_s0 = inlined_call_operand.hbm [shape: f32[16,128], index: 0, kind: input, shape index: {}]   ;;  %s489_s1 = inlined_call_operand.hbm [shape: bf16[16,16], index: 1, kind: input, shape index: {}]   ;;  %s490_s2 = inlined_call_operand.hbm [shape: bf16[128,128], index: 2, kind: input, shape index: {}]   ;;  %s491_s3 = inlined_call_operand.hbm [shape: f32[16,128], index: 3, kind: output, shape index: {}]  }
   0x1   :  { %9 = vsyncpa [#allocation6], 0 }
   0x2   :  { %10 = vsyncpa [#allocation4], 0  ;;  %s398_s12 = smov [#allocation5]   ;;  %s304_s16 = scalar_lea.hbm %s489_s1, 128 }
   0x3   :  { %s28_s13 = sshll.u32 %s398_s12, 4  ;;  %p305_p0 = scmp.ne.s32.totalorder %s489_s1, %s304_s16  ;;  %s29_s13 = int_to_ptr.vmem [resolvable:$true] %s28_s13 }
   0x4   :  { %p308_p1 = scmp.lt.u32.totalorder %s304_s16, %s489_s1 }
   0x6   :  { %p310_p2 = pnand %p308_p1, %p305_p0 }
   0x8   :  { %313 = shalt.err (!%p310_p2)
}
   0x9   :  { %s314_s21 = scalar_lea.vmem %s29_s13, 128  ;;  %p319_p4 = scmp.lt.s32.totalorder %s29_s13, %s29_s13 }
   0xa   :  { %p315_p3 = scmp.ne.s32.totalorder %s29_s13, %s314_s21  ;;  %p320_p5 = scmp.lt.s32.totalorder %s314_s21, %s314_s21 }
   0xc   :  { %p321_p6 = por %p320_p5, %p319_p4 }
   0xe   :  { %p322_p7 = pnand %p321_p6, %p315_p3 }
  0x10   :  { %325 = shalt.err (!%p322_p7)
}
  0x11   :  { %s399_s22 = smov 64   ;;  %s400_s23 = smov 4  }
  0x12   :  { %34 = dma.hbm_to_vmem [thread:$0]  %s489_s1, 128, %s29_s13, [#allocation6], %s399_s22, %s399_s22, %s400_s23  }
  0x13   :  { %s401_s26 = smov [#allocation2]   ;;  %s326_s30 = scalar_lea.hbm %s488_s0, 256 }
  0x14   :  { %s16_s27 = sshll.u32 %s401_s26, 4  ;;  %p327_p8 = scmp.ne.s32.totalorder %s488_s0, %s326_s30  ;;  %s17_s27 = int_to_ptr.vmem [resolvable:$true] %s16_s27 }
  0x15   :  { %p330_p9 = scmp.lt.u32.totalorder %s326_s30, %s488_s0 }
  0x17   :  { %p332_p10 = pnand %p330_p9, %p327_p8 }
  0x19   :  { %335 = shalt.err (!%p332_p10)
}
  0x1a   :  { %s336_s8 = scalar_lea.vmem %s17_s27, 256  ;;  %p341_p12 = scmp.lt.s32.totalorder %s17_s27, %s17_s27 }
  0x1b   :  { %p337_p11 = scmp.ne.s32.totalorder %s17_s27, %s336_s8  ;;  %p342_p13 = scmp.lt.s32.totalorder %s336_s8, %s336_s8 }
  0x1d   :  { %p343_p0 = por %p342_p13, %p341_p12 }
  0x1f   :  { %p344_p1 = pnand %p343_p0, %p337_p11 }
  0x21   :  { %347 = shalt.err (!%p344_p1)
}
  0x22   :  { %s402_s1 = smov 128   ;;  %s403_s9 = smov 8  }
  0x23   :  { %22 = dma.hbm_to_vmem [thread:$0]  %s488_s0, 256, %s17_s27, [#allocation3], %s402_s1, %s402_s1, %s403_s9  }
  0x24   :  { %s404_s12 = smov [#allocation7]   ;;  %s348_s16 = scalar_lea.hbm %s490_s2, 1024 }
  0x25   :  { %s40_s13 = sshll.u32 %s404_s12, 4  ;;  %p349_p2 = scmp.ne.s32.totalorder %s490_s2, %s348_s16  ;;  %s41_s13 = int_to_ptr.vmem [resolvable:$true] %s40_s13 }
  0x26   :  { %p352_p3 = scmp.lt.u32.totalorder %s348_s16, %s490_s2 }
  0x28   :  { %p354_p4 = pnand %p352_p3, %p349_p2 }
  0x2a   :  { %357 = shalt.err (!%p354_p4)
}
  0x2b   :  { %s358_s21 = scalar_lea.vmem %s41_s13, 1024  ;;  %p363_p6 = scmp.lt.s32.totalorder %s41_s13, %s41_s13 }
  0x2c   :  { %p359_p5 = scmp.ne.s32.totalorder %s41_s13, %s358_s21  ;;  %p364_p7 = scmp.lt.s32.totalorder %s358_s21, %s358_s21 }
  0x2e   :  { %p365_p8 = por %p364_p7, %p363_p6 }
  0x30   :  { %p366_p9 = pnand %p365_p8, %p359_p5 }
  0x32   :  { %369 = shalt.err (!%p366_p9)
}
  0x33   :  { %46 = dma.hbm_to_vmem [thread:$0]  %s490_s2, 1024, %s41_s13, [#allocation6], %s399_s22, %s399_s22, %s400_s23  }
  0x34   :  { %392 = dma.done.wait [#allocation3], 256  }
  0x35   :  { %393 = vsyncadd [#allocation3], 4294967040 }
  0x36   :  { %394 = dma.done.wait [#allocation6], 1152  }
  0x37   :  { %395 = vsyncadd [#allocation6], 4294966144  ;;  %v405_v0 = vmov 0.0   ;;  %vm406_vm0 = vmmov 0   ;;  %v57_v1 = vld [vmem:[#allocation2] sm:$0xff]  ;;  %v58_v2 = vld [vmem:[#allocation2 + $0x8] sm:$0xff] }
  0x38   :  { %259 = vmatprep.subr.bf16.mxu0 %v405_v0  ;;  %261 = vmatprep.mubr.msk.bf16.mxu0 %vm406_vm0, %v405_v0  ;;  %v59_v3 = vpack.c.bf16 %v58_v2, %v57_v1  ;;  %v295_v4 = vld [vmem:[#allocation5] sm:$0xff]   ;;  %v296_v5 = vld [vmem:[#allocation7] sm:$0xff]   ;;  %vm67_vm1 = vcmask 130048   ;;  %v297_v6 = vld [vmem:[#allocation7 + $0x8] sm:$0xff]   ;;  %s407_s2 = smov [#allocation8]  }
  0x39   :  { %265 = vmatprep.subr.bf16.mxu1 %v405_v0  ;;  %281 = vmatprep.mubr.msk.bf16.mxu1 %vm406_vm0, %v405_v0  ;;  %v298_v7 = vld [vmem:[#allocation7 + $0x10] sm:$0xff]   ;;  %v299_v8 = vld [vmem:[#allocation7 + $0x18] sm:$0xff]   ;;  %v300_v9 = vld [vmem:[#allocation7 + $0x20] sm:$0xff]   ;;  %s225_s22 = sshll.u32 %s407_s2, 4  ;;  %s226_s22 = int_to_ptr.vmem [resolvable:$true] %s225_s22 }
  0x3a   :  { %260 = vmatpush3.bf16.msra.mxu0 %v59_v3  ;;  %266 = vmatpush3.bf16.msra.mxu1 %v296_v5  ;;  %v301_v10 = vld [vmem:[#allocation7 + $0x28] sm:$0xff]   ;;  %v302_v11 = vld [vmem:[#allocation7 + $0x30] sm:$0xff]   ;;  %v303_v12 = vld [vmem:[#allocation7 + $0x38] sm:$0xff]   ;;  %s370_s23 = scalar_lea.vmem %s226_s22, 256  ;;  %p375_p11 = scmp.lt.s32.totalorder %s226_s22, %s226_s22 }
  0x3b   :  { %267 = vmatprep.subr.bf16.mxu1 %v405_v0  ;;  %p371_p10 = scmp.ne.s32.totalorder %s226_s22, %s370_s23  ;;  %p376_p12 = scmp.lt.s32.totalorder %s370_s23, %s370_s23 }
  0x3d   :  { %262 = vmatmul.mubr.msk.bf16.vlgmr.msra.gmra.mrb[0].mxu0 %vm67_vm1, %v295_v4  ;;  %p377_p13 = por %p376_p12, %p375_p11 }
  0x3e   :  { %268 = vmatpush3.bf16.msra.mxu1 %v297_v6 }
  0x3f   :  { %269 = vmatprep.subr.bf16.mxu1 %v405_v0  ;;  %p378_p0 = pnand %p377_p13, %p371_p10 }
  0x42   :  { %270 = vmatpush3.bf16.msra.mxu1 %v298_v7 }
  0x43   :  { %271 = vmatprep.subr.bf16.mxu1 %v405_v0 }
  0x46   :  { %272 = vmatpush3.bf16.msra.mxu1 %v299_v8 }
  0x47   :  { %273 = vmatprep.subr.bf16.mxu1 %v405_v0 }
  0x4a   :  { %274 = vmatpush3.bf16.msra.mxu1 %v300_v9 }
  0x4b   :  { %275 = vmatprep.subr.bf16.mxu1 %v405_v0 }
  0x4e   :  { %276 = vmatpush3.bf16.msra.mxu1 %v301_v10 }
  0x4f   :  { %277 = vmatprep.subr.bf16.mxu1 %v405_v0 }
  0x52   :  { %278 = vmatpush3.bf16.msra.mxu1 %v302_v11 }
  0x53   :  { %279 = vmatprep.subr.bf16.mxu1 %v405_v0 }
  0x56   :  { %280 = vmatpush3.bf16.msra.mxu1 %v303_v12 }
 0x110   :  { %v105_v13 = vpop.f32.mrb[0].mxu0 }
 0x111   :  { %v263_v14 = vpop.f32.mrb[1].mxu0 }
 0x112   :  { %v108_v15 = vpop.f32.mrb[2].mxu0 }
 0x113   :  { %v112_v16 = vpack.c.bf16 %v108_v15, %v105_v13  ;;  %v264_v17 = vpop.f32.mrb[3].mxu0 }
 0x115   :  { %282 = vmatmul.mubr.bf16.vlgmr.msra.gmra.mrb[0].mxu1 %v112_v16 }
 0x1e8   :  { %v211_v18 = vpop.f32.mrb[0].mxu1 }
 0x1e9   :  { %218 = vst [vmem:[#allocation8] sm:$0xff] %v211_v18  ;;  %v283_v19 = vpop.f32.mrb[1].mxu1 }
 0x1ea   :  { %v214_v20 = vpop.f32.mrb[2].mxu1 }
 0x1eb   :  { %219 = vst [vmem:[#allocation8 + $0x8] sm:$0xff] %v214_v20  ;;  %v284_v21 = vpop.f32.mrb[3].mxu1 }
 0x1ec   :  { %381 = shalt.err (!%p378_p0)
}
 0x1ed   :  { %s382_s27 = scalar_lea.hbm %s491_s3, 256 }
 0x1ee   :  { %p383_p1 = scmp.ne.s32.totalorder %s491_s3, %s382_s27  ;;  %p386_p2 = scmp.lt.u32.totalorder %s382_s27, %s491_s3 }
 0x1f0   :  { %p388_p3 = pnand %p386_p2, %p383_p1 }
 0x1f2   :  { %391 = shalt.err (!%p388_p3)
}
 0x1f3   :  { %231 = dma.vmem_to_hbm [thread:$0]  %s226_s22, 256, %s491_s3, [#allocation4], %s402_s1, %s402_s1, %s403_s9  }
 0x1f4   :  { %396 = dma.done.wait [#allocation4], 256  }
 0x1f5   :  { %397 = vsyncadd [#allocation4], 4294967040 }
 0x1f6   :  { %235 = vsyncpa [#allocation3], 1 }
 0x1f7   :  { %236 = vsyncpa [#allocation6], 1 }
 0x1f8   :  { %237 = vsyncpa [#allocation4], 1 }

</bundles_post_ra>
